<compile_context>
chip_gen: v6e
topology: v6e:2x2x1
jax: 0.10.0
libtpu: 0.0.40
codegen_flags: <defaults>
</compile_context>

<pallas_src>
import jax
import jax.numpy as jnp
from jax.experimental import pallas as pl
from jax.experimental.pallas import tpu as pltpu


def _add_pe_kernel(x_ref, pe_ref, o_ref):
    # x_ref: (TB, TN), pe_ref: (1, TN) broadcast over rows, o_ref: (TB, TN).
    # Single VPU add per vreg; fully hidden under DMA on all generations.
    o_ref[...] = (x_ref[...] + pe_ref[...]).astype(o_ref.dtype)


def _round_down(v, align):
    """Largest multiple of `align` <= v, but never below `align`."""
    return max(align, (v // align) * align)


def _vmem_capacity_bytes():
    try:
        return int(pltpu.get_tpu_info().vmem_capacity_bytes)
    except Exception:
        return 64 * 1024 * 1024  # conservative default (v7x-sized VMEM)


def learnable_positional_encoding(x, pe, *, force_pallas=False, donate_x=False,
                                  min_pallas_bytes=256 * 1024):
    """out = x + pe[:, :L]  with x: (B, L, D), pe: (1, max_len, D), L <= max_len."""
    B, L, D = x.shape
    assert pe.shape[0] == 1 and pe.shape[2] == D and L <= pe.shape[1]

    out_dtype = jnp.result_type(x.dtype, pe.dtype)  # match torch's x + pe promotion

    # ---- small-input fast path: XLA fusion beats any kernel at these sizes ----
    if not force_pallas and B * L * D * x.dtype.itemsize < min_pallas_bytes:
        return (x + pe[:, :L, :]).astype(out_dtype)

    # ---- lane-dense 2D layout: fold (L, D) into a single fast axis ------------
    N = L * D
    x2 = x.reshape(B, N)                   # free: row-major contiguous reshape
    pe2 = pe[:, :L, :].reshape(1, N)       # small contiguous slice of the param

    itemsize_x = x.dtype.itemsize
    itemsize_o = jnp.dtype(out_dtype).itemsize
    packing = max(1, 4 // itemsize_x)      # rows per sublane (f32:1, bf16:2)
    row_align = 8 * packing                # 8 (f32), 16 (bf16), 32 (int8)

    # ---- generation-aware tile & VMEM budgets ----------------------------------
    vmem_cap = _vmem_capacity_bytes()
    if vmem_cap >= 96 * 1024 * 1024:       # v5e / v6e: 128 MiB physical VMEM
        target_tile_bytes = 12 * 1024 * 1024
        vmem_cap_limit = 96 * 1024 * 1024
    else:                                  # v7x: 64 MiB physical VMEM
        target_tile_bytes = 8 * 1024 * 1024
        vmem_cap_limit = 48 * 1024 * 1024

    # Lane tile: prefer the full row (one contiguous DMA per block row; pe DMA'd
    # exactly once for the whole kernel) whenever one aligned row chunk fits.
    if N <= 128 or row_align * N * itemsize_x <= target_tile_bytes:
        tn = N
    else:
        tn = min(N, _round_down(target_tile_bytes // (row_align * itemsize_x), 128))

    # Batch-row tile: biggest aligned tile within the per-buffer byte budget.
    max_rows = max(row_align, target_tile_bytes // max(1, tn * itemsize_x))
    tb = B if B <= max_rows else _round_down(max_rows, row_align)

    # Guard against grid collapse for inputs big enough to pipeline: keep >=4
    # grid steps so prefetch/writeback overlap with compute. Split the batch
    # axis first (keeps full-row contiguous lane DMAs and load-balances v7x's
    # two TensorCores), then the lane axis. Tiny inputs are left as one block.
    nblk = pl.cdiv
    if B * N * itemsize_x >= 2 * 1024 * 1024:
        MIN_GRID_STEPS = 4
        while nblk(N, tn) * nblk(B, tb) < MIN_GRID_STEPS and tb > row_align:
            tb = _round_down(tb // 2, row_align)
        while nblk(N, tn) * nblk(B, tb) < MIN_GRID_STEPS and tn > 128:
            tn = _round_down(tn // 2, 128)

    # Outer axis: lane tiles (pe block index changes here).
    # Inner axis: batch-row tiles (pe block index constant -> pe stays resident).
    grid = (nblk(N, tn), nblk(B, tb))

    # VMEM budget: double-buffered x/out tiles plus the small (1, tn) pe block.
    x_tile_bytes = tb * tn * itemsize_x
    o_tile_bytes = tb * tn * itemsize_o
    pe_tile_bytes = tn * pe.dtype.itemsize
    vmem_needed = 2 * (x_tile_bytes + o_tile_bytes + pe_tile_bytes)
    vmem_limit = int(min(vmem_cap_limit, max(32 * 1024 * 1024, 2 * vmem_needed)))

    grid_spec = pltpu.PrefetchScalarGridSpec(
        num_scalar_prefetch=0,
        grid=grid,
        in_specs=[
            pl.BlockSpec((tb, tn), lambda n, b: (b, n)),   # x row/lane tile
            pl.BlockSpec((1, tn), lambda n, b: (0, n)),    # pe: batch-broadcast
        ],
        out_specs=pl.BlockSpec((tb, tn), lambda n, b: (b, n)),
    )

    # Optional buffer reuse when the caller donates x (only valid same-dtype).
    io_aliases = {0: 0} if (donate_x and x.dtype == out_dtype) else {}

    out2 = pl.pallas_call(
        _add_pe_kernel,
        out_shape=jax.ShapeDtypeStruct((B, N), out_dtype),
        grid_spec=grid_spec,
        input_output_aliases=io_aliases,
        compiler_params=pltpu.CompilerParams(
            dimension_semantics=("parallel", "parallel"),
            vmem_limit_bytes=vmem_limit,
        ),
    )(x2, pe2)

    return out2.reshape(B, L, D)


if __name__ == "__main__":
    # Small shapes consistent with the module's forward:
    #   batch=2, seq len L=8, d_model=32, max_len=16
    B, L, D, MAX_LEN = 2, 8, 32, 16

    key = jax.random.PRNGKey(0)
    kx, kpe, kx2, kpe2 = jax.random.split(key, 4)

    x = jax.random.normal(kx, (B, L, D), dtype=jnp.float32)
    pe = jax.random.normal(kpe, (1, MAX_LEN, D), dtype=jnp.float32)  # randn-like param

    # 1) Run the Pallas kernel itself (forced) at the module's small shapes.
    out = learnable_positional_encoding(x, pe, force_pallas=True)
    out = jax.block_until_ready(out)
    ref = x + pe[:, :L]
    assert out.shape == (B, L, D) and out.dtype == ref.dtype
    assert jnp.allclose(out, ref, atol=1e-6, rtol=1e-6)

    # 2) Default auto path: tiny inputs take the XLA fast path; same numerics.
    out_auto = jax.block_until_ready(learnable_positional_encoding(x, pe))
    assert jnp.allclose(out_auto, ref, atol=1e-6, rtol=1e-6)

    # 3) Modestly larger shape to exercise the multi-block pipelined grid path.
    B2, L2, D2, MAX2 = 16, 512, 128, 1024
    x_big = jax.random.normal(kx2, (B2, L2, D2), dtype=jnp.float32)
    pe_big = jax.random.normal(kpe2, (1, MAX2, D2), dtype=jnp.float32)
    out_big = jax.block_until_ready(learnable_positional_encoding(x_big, pe_big))
    ref_big = x_big + pe_big[:, :L2]
    assert jnp.allclose(out_big, ref_big, atol=1e-6, rtol=1e-6)

    print("KERNEL_OK")
</pallas_src>

<mosaic_0001>
module attributes {stable_mosaic.version = 11 : i64} {
  func.func @_add_pe_kernel(%arg0: i32, %arg1: i32, %arg2: memref<2x256xf32, #tpu.memory_space<vmem>>, %arg3: memref<1x256xf32, #tpu.memory_space<vmem>>, %arg4: memref<2x256xf32, #tpu.memory_space<vmem>>) attributes {dimension_semantics = [#tpu.dimension_semantics<parallel>, #tpu.dimension_semantics<parallel>], iteration_bounds = array<i64: 1, 1>, scalar_prefetch = 0 : i64, scratch_operands = 0 : i64, tpu.core_type = #tpu.core_type<tc>, window_params = [{transform_indices = @transform_0, window_bounds = array<i64: 2, 256>}, {transform_indices = @transform_1, window_bounds = array<i64: 1, 256>}, {transform_indices = @transform_2, window_bounds = array<i64: 2, 256>}]} {
    %c0 = arith.constant 0 : index
    %c0_0 = arith.constant 0 : index
    %0 = vector.load %arg2[%c0, %c0_0] : memref<2x256xf32, #tpu.memory_space<vmem>>, vector<2x256xf32>
    %c0_1 = arith.constant 0 : index
    %c0_2 = arith.constant 0 : index
    %1 = vector.load %arg3[%c0_1, %c0_2] : memref<1x256xf32, #tpu.memory_space<vmem>>, vector<1x256xf32>
    %2 = vector.broadcast %1 : vector<1x256xf32> to vector<2x256xf32>
    %3 = arith.addf %0, %2 : vector<2x256xf32>
    %c0_3 = arith.constant 0 : index
    %c0_4 = arith.constant 0 : index
    %4 = vector.load %arg4[%c0_3, %c0_4] : memref<2x256xf32, #tpu.memory_space<vmem>>, vector<2x256xf32>
    tpu.vector_store %arg4[%c0_3, %c0_4], %3 {strides = array<i32>} : memref<2x256xf32, #tpu.memory_space<vmem>>, vector<2x256xf32>,
    return
  }
  func.func @transform_0(%arg0: i32, %arg1: i32) -> (i32, i32) {
    %c0_i32 = arith.constant 0 : i32
    return %arg1, %arg0 : i32, i32
  }
  func.func @transform_1(%arg0: i32, %arg1: i32) -> (i32, i32) {
    %c0_i32 = arith.constant 0 : i32
    %c0_i32_0 = arith.constant 0 : i32
    return %c0_i32, %arg0 : i32, i32
  }
  func.func @transform_2(%arg0: i32, %arg1: i32) -> (i32, i32) {
    %c0_i32 = arith.constant 0 : i32
    return %arg1, %arg0 : i32, i32
  }
}

</mosaic_0001>

<bundles_post_ra>
// kernel: tpu_custom_call.1
= control target key start
LH: loop header
LB: loop body
LE: loop exit
PB: predicated region body
PF: predicated region fallthrough
CT: control target
= control target key end

     0   :  { %7 = vsyncpa [#allocation3], 0  ;;  %s172_s0 = inlined_call_operand.hbm [shape: f32[2,256], index: 0, kind: input, shape index: {}]   ;;  %s173_s1 = inlined_call_operand.hbm [shape: f32[1,256], index: 1, kind: input, shape index: {}]   ;;  %s174_s2 = inlined_call_operand.hbm [shape: f32[2,256], index: 2, kind: output, shape index: {}]  }
   0x1   :  { %8 = vsyncpa [#allocation6], 0 }
   0x2   :  { %9 = vsyncpa [#allocation4], 0  ;;  %s144_s9 = smov [#allocation2]   ;;  %s145_s11 = smov [#allocation5]  }
   0x3   :  { %s16_s10 = sshll.u32 %s144_s9, 4  ;;  %s26_s12 = sshll.u32 %s145_s11, 4  ;;  %s17_s10 = int_to_ptr.vmem [resolvable:$true] %s16_s10  ;;  %s27_s12 = int_to_ptr.vmem [resolvable:$true] %s26_s12 }
   0x4   :  { %s86_s13 = scalar_lea.vmem %s17_s10, 64  ;;  %p91_p1 = scmp.lt.s32.totalorder %s17_s10, %s17_s10 }
   0x5   :  { %p87_p0 = scmp.ne.s32.totalorder %s17_s10, %s86_s13  ;;  %p92_p2 = scmp.lt.s32.totalorder %s86_s13, %s86_s13 }
   0x7   :  { %p93_p3 = por %p92_p2, %p91_p1 }
   0x9   :  { %p94_p4 = pnand %p93_p3, %p87_p0 }
   0xb   :  { %97 = shalt.err (!%p94_p4)
}
   0xc   :  { %19 = dma.hbm_to_vmem [thread:$0]  %s172_s0, 64, %s17_s10, [#allocation3]  }
   0xd   :  { %s106_s16 = scalar_lea.vmem %s27_s12, 32  ;;  %p111_p6 = scmp.lt.s32.totalorder %s27_s12, %s27_s12 }
   0xe   :  { %p107_p5 = scmp.ne.s32.totalorder %s27_s12, %s106_s16  ;;  %p112_p7 = scmp.lt.s32.totalorder %s106_s16, %s106_s16 }
  0x10   :  { %p113_p8 = por %p112_p7, %p111_p6 }
  0x12   :  { %p114_p9 = pnand %p113_p8, %p107_p5 }
  0x14   :  { %117 = shalt.err (!%p114_p9)
}
  0x15   :  { %29 = dma.hbm_to_vmem [thread:$0]  %s173_s1, 32, %s27_s12, [#allocation6]  }
  0x16   :  { %138 = dma.done.wait [#allocation3], 64  }
  0x17   :  { %139 = vsyncadd [#allocation3], 4294967232 }
  0x18   :  { %140 = dma.done.wait [#allocation6], 32  }
  0x19   :  { %141 = vsyncadd [#allocation6], 4294967264  ;;  %v39_v0 = vlaneseq  ;;  %v146_v1 = vmov 1983009808   ;;  %v37_v7 = vld [vmem:[#allocation5] sm:$0x3] }
  0x1a   :  { %v49_v2 = vunpack.c.l.s4 %v146_v1  ;;  %v36_v12 = vld [vmem:[#allocation2] sm:$0xf]  ;;  %s147_s0 = smov [#allocation7]  }
  0x1b   :  { %v40_v3 = vshrl.u32 %v39_v0, 7  ;;  %s64_s19 = sshll.u32 %s147_s0, 4  ;;  %s65_s19 = int_to_ptr.vmem [resolvable:$true] %s64_s19 }
  0x1c   :  { %v50_v6 = vunpack.c.0.s8 %v49_v2  ;;  %s118_s1 = scalar_lea.vmem %s65_s19, 64  ;;  %p123_p11 = scmp.lt.s32.totalorder %s65_s19, %s65_s19 }
  0x1d   :  { %v41_v4 = vsub.s32 0, %v40_v3  ;;  %v45_v5 = vsub.s32 1, %v40_v3  ;;  %p119_p10 = scmp.ne.s32.totalorder %s65_s19, %s118_s1  ;;  %p124_p12 = scmp.lt.s32.totalorder %s118_s1, %s118_s1 }
  0x1e   :  { %v53_v10 = vsub.s32 %v50_v6, %v40_v3 }
  0x1f   :  { %v42_v8 = vrot.slane %v37_v7, %v41_v4  ;;  %v46_v9 = vrot.slane %v37_v7, %v45_v5  ;;  %p125_p13 = por %p124_p12, %p123_p11 }
  0x21   :  { %v47_v11 = vcombine.low %v42_v8, %v46_v9  ;;  %p126_p0 = pnand %p125_p13, %p119_p10 }
  0x23   :  { %v54_v13 = vrot.slane %v47_v11, %v53_v10 }
  0x25   :  { %v56_v14 = vadd.f32 %v54_v13, %v36_v12 }
  0x27   :  { %57 = vst [vmem:[#allocation7] sm:$0xf] %v56_v14 }
  0x28   :  { %129 = shalt.err (!%p126_p0)
}
  0x29   :  { %67 = dma.vmem_to_hbm [thread:$0]  %s65_s19, 64, %s174_s2, [#allocation4]  }
  0x2a   :  { %142 = dma.done.wait [#allocation4], 64  }
  0x2b   :  { %143 = vsyncadd [#allocation4], 4294967232 }
  0x2c   :  { %71 = vsyncpa [#allocation3], 1 }
  0x2d   :  { %72 = vsyncpa [#allocation6], 1 }
  0x2e   :  { %73 = vsyncpa [#allocation4], 1 }

</bundles_post_ra>
